<compile_context>
chip_gen: v6e
topology: v6e:2x2x1
jax: 0.10.0
libtpu: 0.0.40
codegen_flags: <defaults>
</compile_context>

<pallas_src>
import functools

import jax
import jax.numpy as jnp
from jax.experimental import pallas as pl
from jax.experimental.pallas import tpu as pltpu


def _encoder_kernel(cnt_ref, x_ref,
                    w1_ref, as1_ref, ad1_ref, b1_ref,
                    w2_ref, as2_ref, ad2_ref, b2_ref,
                    out_ref, h1_ref, *, heads, f1, f2):
    """Fused Encoder forward: ELU(GAT2(ELU(GAT1(x)))) in one kernel.

    cnt_ref:  (N, N) bf16   cnt[i, j] = multiplicity of edge j -> i (incl. one self-loop)
    x_ref:    (N, F_in)     encoded node features
    w*_ref:   (F_in, heads*f)   projection weights
    as*/ad*:  (heads, f)        attention vectors (source / destination)
    b*_ref:   (1, heads*f)      bias (added after head concat)
    out_ref:  (N, heads*f2)     final output
    h1_ref:   (N, heads*f1)     VMEM scratch holding layer-1 output
    """
    # Cast the adjacency/count matrix once; reused by both layers and all heads.
    cnt = cnt_ref[...].astype(jnp.float32)                       # (N, N)

    def gat_layer(x, w_ref, asrc_ref, adst_ref, b_ref, dst_ref, f_out):
        # Linear projection for all heads at once (MXU).
        h = jnp.dot(x, w_ref[...], preferred_element_type=jnp.float32)  # (N, heads*f_out)

        for hd in range(heads):
            sl = slice(hd * f_out, (hd + 1) * f_out)
            hh = h[:, sl]                                        # (N, f_out)
            adst = adst_ref[hd:hd + 1, :]                        # (1, f_out)
            asrc = asrc_ref[hd:hd + 1, :]                        # (1, f_out)

            # alpha_dst[i] = h_i . a_dst : VPU multiply + lane (XLU) reduce -> (N, 1).
            a_dst = jnp.sum(hh * adst, axis=-1, keepdims=True)
            # alpha_src[j] = h_j . a_src as a lane-dense row (1, N).
            a_src = jax.lax.dot_general(asrc, hh, (((1,), (1,)), ((), ())),
                                        preferred_element_type=jnp.float32)

            # e[i, j] = LeakyReLU(alpha_dst[i] + alpha_src[j], slope=0.2)
            e = a_dst + a_src                                    # (N, N) outer sum
            e = jnp.where(e > 0, e, 0.2 * e)

            # Masked softmax over incoming edges, normalization folded into the
            # epilogue.  Max over the full row is a valid (stable) upper bound;
            # the count multiply both masks non-edges and weights duplicate edges.
            e_max = jnp.max(e, axis=-1, keepdims=True)           # (N, 1)
            p = cnt * jnp.exp(e - e_max)                         # (N, N), unnormalized
            agg = jnp.dot(p, hh, preferred_element_type=jnp.float32)  # (N, f_out)
            denom = jnp.sum(p, axis=-1, keepdims=True)           # (N, 1), >= 1 (self-loop)

            val = agg * pl.reciprocal(denom, approx=True) + b_ref[:, sl]
            # ELU (alpha = 1.0), written straight into this head's lane slice.
            dst_ref[:, sl] = jnp.where(val > 0, val,
                                       jnp.exp(jnp.minimum(val, 0.0)) - 1.0)

    # conv1 -> ELU into VMEM scratch, then conv2 -> ELU into the output.
    gat_layer(x_ref[...], w1_ref, as1_ref, ad1_ref, b1_ref, h1_ref, f1)
    gat_layer(h1_ref[...], w2_ref, as2_ref, ad2_ref, b2_ref, out_ref, f2)


def encoder_forward(x_ids, edge_index, word_vectors, params, *,
                    n_nodes, heads, out_channels):
    """Mirrors Encoder.forward: returns (elu(conv2(elu(conv1(enc)))), encoded)."""
    # TODO(synk): afeatures.FeatureEncoding is an external module; approximated
    # here as the WORDEMBEDDING path (word-vector embedding lookup), in glue JAX.
    encoded = jnp.take(word_vectors, x_ids, axis=0)              # (N, in_channels)

    # Edge multiplicity matrix cnt[dst, src] (duplicate edges counted), with
    # existing self-loops removed and exactly one self-loop added per node,
    # matching PyG GATConv's remove_self_loops + add_self_loops.  Stored bf16.
    src, dst = edge_index[0], edge_index[1]
    off_diag = (src != dst).astype(jnp.float32)
    cnt = jnp.zeros((n_nodes, n_nodes), jnp.float32).at[dst, src].add(off_diag)
    cnt = (cnt + jnp.eye(n_nodes, dtype=jnp.float32)).astype(jnp.bfloat16)

    f1 = 2 * out_channels      # per-head width of conv1
    f2 = out_channels          # per-head width of conv2
    kernel = functools.partial(_encoder_kernel, heads=heads, f1=f1, f2=f2)

    out = pl.pallas_call(
        kernel,
        out_shape=jax.ShapeDtypeStruct((n_nodes, heads * f2), jnp.float32),
        in_specs=[pl.BlockSpec(memory_space=pltpu.MemorySpace.VMEM)] * 10,
        out_specs=pl.BlockSpec(memory_space=pltpu.MemorySpace.VMEM),
        scratch_shapes=[pltpu.VMEM((n_nodes, heads * f1), jnp.float32)],
    )(cnt, encoded,
      params["w1"], params["as1"], params["ad1"], params["b1"],
      params["w2"], params["as2"], params["ad2"], params["b2"])
    return out, encoded


if __name__ == "__main__":
    key = jax.random.PRNGKey(0)
    keys = jax.random.split(key, 10)

    # Small synthetic sizes consistent with the module.
    N = 16                 # number of graph nodes
    E = 24                 # number of directed edges
    vocab = 50             # word2vec vocab size
    in_channels = 32       # word-embedding dim == GAT in_channels
    out_channels = 16
    heads = 2

    # Deterministic parameters (synthetic, not a checkpoint).
    word_vectors = 0.1 * jax.random.normal(keys[0], (vocab, in_channels), jnp.float32)

    f1 = 2 * out_channels  # conv1: GATConv(in_channels, 2*out_channels, heads)
    f2 = out_channels      # conv2: GATConv(2*heads*out_channels, out_channels, heads)
    params = {
        "w1":  0.1 * jax.random.normal(keys[1], (in_channels, heads * f1), jnp.float32),
        "as1": 0.1 * jax.random.normal(keys[2], (heads, f1), jnp.float32),
        "ad1": 0.1 * jax.random.normal(keys[3], (heads, f1), jnp.float32),
        "b1":  jnp.zeros((1, heads * f1), jnp.float32),
        "w2":  0.1 * jax.random.normal(keys[4], (heads * f1, heads * f2), jnp.float32),
        "as2": 0.1 * jax.random.normal(keys[5], (heads, f2), jnp.float32),
        "ad2": 0.1 * jax.random.normal(keys[6], (heads, f2), jnp.float32),
        "b2":  jnp.zeros((1, heads * f2), jnp.float32),
    }

    # Inputs: node word-ids (consumed by the feature encoder) and edge_index.
    x_ids = jax.random.randint(keys[7], (N,), 0, vocab, dtype=jnp.int32)
    src = jax.random.randint(keys[8], (E,), 0, N, dtype=jnp.int32)
    dst = jax.random.randint(keys[9], (E,), 0, N, dtype=jnp.int32)
    edge_index = jnp.stack([src, dst], axis=0)                   # (2, E)

    out, encoded = encoder_forward(
        x_ids, edge_index, word_vectors, params,
        n_nodes=N, heads=heads, out_channels=out_channels)
    out = jax.block_until_ready(out)
    encoded = jax.block_until_ready(encoded)

    assert out.shape == (N, heads * out_channels)
    assert encoded.shape == (N, in_channels)
    assert bool(jnp.all(jnp.isfinite(out)))
    print("KERNEL_OK")
</pallas_src>

<mosaic_0001>
module attributes {stable_mosaic.version = 11 : i64} {
  func.func @_encoder_kernel(%arg0: memref<16x16xbf16, #tpu.memory_space<vmem>>, %arg1: memref<16x32xf32, #tpu.memory_space<vmem>>, %arg2: memref<32x64xf32, #tpu.memory_space<vmem>>, %arg3: memref<2x32xf32, #tpu.memory_space<vmem>>, %arg4: memref<2x32xf32, #tpu.memory_space<vmem>>, %arg5: memref<1x64xf32, #tpu.memory_space<vmem>>, %arg6: memref<64x32xf32, #tpu.memory_space<vmem>>, %arg7: memref<2x16xf32, #tpu.memory_space<vmem>>, %arg8: memref<2x16xf32, #tpu.memory_space<vmem>>, %arg9: memref<1x32xf32, #tpu.memory_space<vmem>>, %arg10: memref<16x32xf32, #tpu.memory_space<vmem>>, %arg11: memref<16x64xf32, #tpu.memory_space<vmem>>) attributes {dimension_semantics = [], scalar_prefetch = 0 : i64, scratch_operands = 1 : i64, tpu.core_type = #tpu.core_type<tc>} {
    %c0 = arith.constant 0 : index
    %c0_0 = arith.constant 0 : index
    %0 = vector.load %arg0[%c0, %c0_0] : memref<16x16xbf16, #tpu.memory_space<vmem>>, vector<16x16xbf16>
    %1 = arith.extf %0 : vector<16x16xbf16> to vector<16x16xf32>
    %c0_1 = arith.constant 0 : index
    %c0_2 = arith.constant 0 : index
    %2 = vector.load %arg1[%c0_1, %c0_2] : memref<16x32xf32, #tpu.memory_space<vmem>>, vector<16x32xf32>
    %c0_3 = arith.constant 0 : index
    %c0_4 = arith.constant 0 : index
    %3 = vector.load %arg2[%c0_3, %c0_4] : memref<32x64xf32, #tpu.memory_space<vmem>>, vector<32x64xf32>
    %cst = arith.constant dense<0.000000e+00> : vector<16x64xf32>
    %4 = tpu.matmul %2, %3, %cst {dimension_numbers = #tpu.dot_dimension_numbers<[1], [0], [0], [1], [0, 0, 1, 1], [], []>} : vector<16x32xf32>, vector<32x64xf32>, vector<16x64xf32> -> vector<16x64xf32>
    %5 = vector.extract_strided_slice %4 {offsets = [0, 0], sizes = [16, 32], strides = [1, 1]} : vector<16x64xf32> to vector<16x32xf32>
    %c0_5 = arith.constant 0 : index
    %c0_6 = arith.constant 0 : index
    %6 = vector.load %arg4[%c0_5, %c0_6] : memref<2x32xf32, #tpu.memory_space<vmem>>, vector<1x32xf32>
    %c0_7 = arith.constant 0 : index
    %c0_8 = arith.constant 0 : index
    %7 = vector.load %arg3[%c0_7, %c0_8] : memref<2x32xf32, #tpu.memory_space<vmem>>, vector<1x32xf32>
    %8 = vector.broadcast %6 : vector<1x32xf32> to vector<16x32xf32>
    %9 = arith.mulf %5, %8 : vector<16x32xf32>
    %cst_9 = arith.constant dense<0.000000e+00> : vector<16xf32>
    %10 = vector.multi_reduction <add>, %9, %cst_9 [1] : vector<16x32xf32> to vector<16xf32>
    %11 = vector.shape_cast %10 : vector<16xf32> to vector<16x1xf32>
    %cst_10 = arith.constant dense<0.000000e+00> : vector<1x16xf32>
    %12 = tpu.matmul %7, %5, %cst_10 {dimension_numbers = #tpu.dot_dimension_numbers<[1], [1], [0], [0], [0, 0, 1, 0], [], []>} : vector<1x32xf32>, vector<16x32xf32>, vector<1x16xf32> -> vector<1x16xf32>
    %13 = vector.broadcast %11 : vector<16x1xf32> to vector<16x16xf32>
    %14 = vector.broadcast %12 : vector<1x16xf32> to vector<16x16xf32>
    %15 = arith.addf %13, %14 : vector<16x16xf32>
    %cst_11 = arith.constant 0.000000e+00 : f32
    %16 = vector.broadcast %cst_11 : f32 to vector<16x16xf32>
    %17 = arith.cmpf ogt, %15, %16 : vector<16x16xf32>
    %cst_12 = arith.constant 2.000000e-01 : f32
    %18 = vector.broadcast %cst_12 : f32 to vector<16x16xf32>
    %19 = arith.mulf %18, %15 : vector<16x16xf32>
    %20 = arith.select %17, %15, %19 : vector<16x16xi1>, vector<16x16xf32>
    %cst_13 = arith.constant dense<0xFF800000> : vector<16xf32>
    %21 = vector.multi_reduction <maximumf>, %20, %cst_13 [1] : vector<16x16xf32> to vector<16xf32>
    %22 = vector.shape_cast %21 : vector<16xf32> to vector<16x1xf32>
    %23 = vector.broadcast %22 : vector<16x1xf32> to vector<16x16xf32>
    %24 = arith.subf %20, %23 : vector<16x16xf32>
    %25 = math.exp %24 : vector<16x16xf32>
    %26 = arith.mulf %1, %25 : vector<16x16xf32>
    %cst_14 = arith.constant dense<0.000000e+00> : vector<16x32xf32>
    %27 = tpu.matmul %26, %5, %cst_14 {dimension_numbers = #tpu.dot_dimension_numbers<[1], [0], [0], [1], [0, 0, 1, 1], [], []>} : vector<16x16xf32>, vector<16x32xf32>, vector<16x32xf32> -> vector<16x32xf32>
    %cst_15 = arith.constant dense<0.000000e+00> : vector<16xf32>
    %28 = vector.multi_reduction <add>, %26, %cst_15 [1] : vector<16x16xf32> to vector<16xf32>
    %29 = vector.shape_cast %28 : vector<16xf32> to vector<16x1xf32>
    %30 = tpu.reciprocal %29 {approx = true} : vector<16x1xf32> -> vector<16x1xf32>
    %31 = vector.broadcast %30 : vector<16x1xf32> to vector<16x32xf32>
    %32 = arith.mulf %27, %31 : vector<16x32xf32>
    %c0_16 = arith.constant 0 : index
    %c0_17 = arith.constant 0 : index
    %33 = vector.load %arg5[%c0_16, %c0_17] : memref<1x64xf32, #tpu.memory_space<vmem>>, vector<1x32xf32>
    %34 = vector.broadcast %33 : vector<1x32xf32> to vector<16x32xf32>
    %35 = arith.addf %32, %34 : vector<16x32xf32>
    %cst_18 = arith.constant 0.000000e+00 : f32
    %36 = vector.broadcast %cst_18 : f32 to vector<16x32xf32>
    %37 = arith.cmpf ogt, %35, %36 : vector<16x32xf32>
    %cst_19 = arith.constant 0.000000e+00 : f32
    %38 = vector.broadcast %cst_19 : f32 to vector<16x32xf32>
    %39 = arith.minimumf %35, %38 : vector<16x32xf32>
    %40 = math.exp %39 : vector<16x32xf32>
    %cst_20 = arith.constant 1.000000e+00 : f32
    %41 = vector.broadcast %cst_20 : f32 to vector<16x32xf32>
    %42 = arith.subf %40, %41 : vector<16x32xf32>
    %43 = arith.select %37, %35, %42 : vector<16x32xi1>, vector<16x32xf32>
    %c0_21 = arith.constant 0 : index
    %c0_22 = arith.constant 0 : index
    %44 = vector.load %arg11[%c0_21, %c0_22] : memref<16x64xf32, #tpu.memory_space<vmem>>, vector<16x32xf32>
    tpu.vector_store %arg11[%c0_21, %c0_22], %43 {strides = array<i32>} : memref<16x64xf32, #tpu.memory_space<vmem>>, vector<16x32xf32>,
    %45 = vector.extract_strided_slice %4 {offsets = [0, 32], sizes = [16, 32], strides = [1, 1]} : vector<16x64xf32> to vector<16x32xf32>
    %c1 = arith.constant 1 : index
    %c0_23 = arith.constant 0 : index
    %46 = vector.load %arg4[%c1, %c0_23] : memref<2x32xf32, #tpu.memory_space<vmem>>, vector<1x32xf32>
    %c1_24 = arith.constant 1 : index
    %c0_25 = arith.constant 0 : index
    %47 = vector.load %arg3[%c1_24, %c0_25] : memref<2x32xf32, #tpu.memory_space<vmem>>, vector<1x32xf32>
    %48 = vector.broadcast %46 : vector<1x32xf32> to vector<16x32xf32>
    %49 = arith.mulf %45, %48 : vector<16x32xf32>
    %cst_26 = arith.constant dense<0.000000e+00> : vector<16xf32>
    %50 = vector.multi_reduction <add>, %49, %cst_26 [1] : vector<16x32xf32> to vector<16xf32>
    %51 = vector.shape_cast %50 : vector<16xf32> to vector<16x1xf32>
    %cst_27 = arith.constant dense<0.000000e+00> : vector<1x16xf32>
    %52 = tpu.matmul %47, %45, %cst_27 {dimension_numbers = #tpu.dot_dimension_numbers<[1], [1], [0], [0], [0, 0, 1, 0], [], []>} : vector<1x32xf32>, vector<16x32xf32>, vector<1x16xf32> -> vector<1x16xf32>
    %53 = vector.broadcast %51 : vector<16x1xf32> to vector<16x16xf32>
    %54 = vector.broadcast %52 : vector<1x16xf32> to vector<16x16xf32>
    %55 = arith.addf %53, %54 : vector<16x16xf32>
    %cst_28 = arith.constant 0.000000e+00 : f32
    %56 = vector.broadcast %cst_28 : f32 to vector<16x16xf32>
    %57 = arith.cmpf ogt, %55, %56 : vector<16x16xf32>
    %cst_29 = arith.constant 2.000000e-01 : f32
    %58 = vector.broadcast %cst_29 : f32 to vector<16x16xf32>
    %59 = arith.mulf %58, %55 : vector<16x16xf32>
    %60 = arith.select %57, %55, %59 : vector<16x16xi1>, vector<16x16xf32>
    %cst_30 = arith.constant dense<0xFF800000> : vector<16xf32>
    %61 = vector.multi_reduction <maximumf>, %60, %cst_30 [1] : vector<16x16xf32> to vector<16xf32>
    %62 = vector.shape_cast %61 : vector<16xf32> to vector<16x1xf32>
    %63 = vector.broadcast %62 : vector<16x1xf32> to vector<16x16xf32>
    %64 = arith.subf %60, %63 : vector<16x16xf32>
    %65 = math.exp %64 : vector<16x16xf32>
    %66 = arith.mulf %1, %65 : vector<16x16xf32>
    %cst_31 = arith.constant dense<0.000000e+00> : vector<16x32xf32>
    %67 = tpu.matmul %66, %45, %cst_31 {dimension_numbers = #tpu.dot_dimension_numbers<[1], [0], [0], [1], [0, 0, 1, 1], [], []>} : vector<16x16xf32>, vector<16x32xf32>, vector<16x32xf32> -> vector<16x32xf32>
    %cst_32 = arith.constant dense<0.000000e+00> : vector<16xf32>
    %68 = vector.multi_reduction <add>, %66, %cst_32 [1] : vector<16x16xf32> to vector<16xf32>
    %69 = vector.shape_cast %68 : vector<16xf32> to vector<16x1xf32>
    %70 = tpu.reciprocal %69 {approx = true} : vector<16x1xf32> -> vector<16x1xf32>
    %71 = vector.broadcast %70 : vector<16x1xf32> to vector<16x32xf32>
    %72 = arith.mulf %67, %71 : vector<16x32xf32>
    %c0_33 = arith.constant 0 : index
    %c32 = arith.constant 32 : index
    %73 = vector.load %arg5[%c0_33, %c32] : memref<1x64xf32, #tpu.memory_space<vmem>>, vector<1x32xf32>
    %74 = vector.broadcast %73 : vector<1x32xf32> to vector<16x32xf32>
    %75 = arith.addf %72, %74 : vector<16x32xf32>
    %cst_34 = arith.constant 0.000000e+00 : f32
    %76 = vector.broadcast %cst_34 : f32 to vector<16x32xf32>
    %77 = arith.cmpf ogt, %75, %76 : vector<16x32xf32>
    %cst_35 = arith.constant 0.000000e+00 : f32
    %78 = vector.broadcast %cst_35 : f32 to vector<16x32xf32>
    %79 = arith.minimumf %75, %78 : vector<16x32xf32>
    %80 = math.exp %79 : vector<16x32xf32>
    %cst_36 = arith.constant 1.000000e+00 : f32
    %81 = vector.broadcast %cst_36 : f32 to vector<16x32xf32>
    %82 = arith.subf %80, %81 : vector<16x32xf32>
    %83 = arith.select %77, %75, %82 : vector<16x32xi1>, vector<16x32xf32>
    %c0_37 = arith.constant 0 : index
    %c32_38 = arith.constant 32 : index
    %84 = vector.load %arg11[%c0_37, %c32_38] : memref<16x64xf32, #tpu.memory_space<vmem>>, vector<16x32xf32>
    tpu.vector_store %arg11[%c0_37, %c32_38], %83 {strides = array<i32>} : memref<16x64xf32, #tpu.memory_space<vmem>>, vector<16x32xf32>,
    %c0_39 = arith.constant 0 : index
    %c0_40 = arith.constant 0 : index
    %85 = vector.load %arg11[%c0_39, %c0_40] : memref<16x64xf32, #tpu.memory_space<vmem>>, vector<16x64xf32>
    %c0_41 = arith.constant 0 : index
    %c0_42 = arith.constant 0 : index
    %86 = vector.load %arg6[%c0_41, %c0_42] : memref<64x32xf32, #tpu.memory_space<vmem>>, vector<64x32xf32>
    %cst_43 = arith.constant dense<0.000000e+00> : vector<16x32xf32>
    %87 = tpu.matmul %85, %86, %cst_43 {dimension_numbers = #tpu.dot_dimension_numbers<[1], [0], [0], [1], [0, 0, 1, 1], [], []>} : vector<16x64xf32>, vector<64x32xf32>, vector<16x32xf32> -> vector<16x32xf32>
    %88 = vector.extract_strided_slice %87 {offsets = [0, 0], sizes = [16, 16], strides = [1, 1]} : vector<16x32xf32> to vector<16x16xf32>
    %c0_44 = arith.constant 0 : index
    %c0_45 = arith.constant 0 : index
    %89 = vector.load %arg8[%c0_44, %c0_45] : memref<2x16xf32, #tpu.memory_space<vmem>>, vector<1x16xf32>
    %c0_46 = arith.constant 0 : index
    %c0_47 = arith.constant 0 : index
    %90 = vector.load %arg7[%c0_46, %c0_47] : memref<2x16xf32, #tpu.memory_space<vmem>>, vector<1x16xf32>
    %91 = vector.broadcast %89 : vector<1x16xf32> to vector<16x16xf32>
    %92 = arith.mulf %88, %91 : vector<16x16xf32>
    %cst_48 = arith.constant dense<0.000000e+00> : vector<16xf32>
    %93 = vector.multi_reduction <add>, %92, %cst_48 [1] : vector<16x16xf32> to vector<16xf32>
    %94 = vector.shape_cast %93 : vector<16xf32> to vector<16x1xf32>
    %cst_49 = arith.constant dense<0.000000e+00> : vector<1x16xf32>
    %95 = tpu.matmul %90, %88, %cst_49 {dimension_numbers = #tpu.dot_dimension_numbers<[1], [1], [0], [0], [0, 0, 1, 0], [], []>} : vector<1x16xf32>, vector<16x16xf32>, vector<1x16xf32> -> vector<1x16xf32>
    %96 = vector.broadcast %94 : vector<16x1xf32> to vector<16x16xf32>
    %97 = vector.broadcast %95 : vector<1x16xf32> to vector<16x16xf32>
    %98 = arith.addf %96, %97 : vector<16x16xf32>
    %cst_50 = arith.constant 0.000000e+00 : f32
    %99 = vector.broadcast %cst_50 : f32 to vector<16x16xf32>
    %100 = arith.cmpf ogt, %98, %99 : vector<16x16xf32>
    %cst_51 = arith.constant 2.000000e-01 : f32
    %101 = vector.broadcast %cst_51 : f32 to vector<16x16xf32>
    %102 = arith.mulf %101, %98 : vector<16x16xf32>
    %103 = arith.select %100, %98, %102 : vector<16x16xi1>, vector<16x16xf32>
    %cst_52 = arith.constant dense<0xFF800000> : vector<16xf32>
    %104 = vector.multi_reduction <maximumf>, %103, %cst_52 [1] : vector<16x16xf32> to vector<16xf32>
    %105 = vector.shape_cast %104 : vector<16xf32> to vector<16x1xf32>
    %106 = vector.broadcast %105 : vector<16x1xf32> to vector<16x16xf32>
    %107 = arith.subf %103, %106 : vector<16x16xf32>
    %108 = math.exp %107 : vector<16x16xf32>
    %109 = arith.mulf %1, %108 : vector<16x16xf32>
    %cst_53 = arith.constant dense<0.000000e+00> : vector<16x16xf32>
    %110 = tpu.matmul %109, %88, %cst_53 {dimension_numbers = #tpu.dot_dimension_numbers<[1], [0], [0], [1], [0, 0, 1, 1], [], []>} : vector<16x16xf32>, vector<16x16xf32>, vector<16x16xf32> -> vector<16x16xf32>
    %cst_54 = arith.constant dense<0.000000e+00> : vector<16xf32>
    %111 = vector.multi_reduction <add>, %109, %cst_54 [1] : vector<16x16xf32> to vector<16xf32>
    %112 = vector.shape_cast %111 : vector<16xf32> to vector<16x1xf32>
    %113 = tpu.reciprocal %112 {approx = true} : vector<16x1xf32> -> vector<16x1xf32>
    %114 = vector.broadcast %113 : vector<16x1xf32> to vector<16x16xf32>
    %115 = arith.mulf %110, %114 : vector<16x16xf32>
    %c0_55 = arith.constant 0 : index
    %c0_56 = arith.constant 0 : index
    %116 = vector.load %arg9[%c0_55, %c0_56] : memref<1x32xf32, #tpu.memory_space<vmem>>, vector<1x16xf32>
    %117 = vector.broadcast %116 : vector<1x16xf32> to vector<16x16xf32>
    %118 = arith.addf %115, %117 : vector<16x16xf32>
    %cst_57 = arith.constant 0.000000e+00 : f32
    %119 = vector.broadcast %cst_57 : f32 to vector<16x16xf32>
    %120 = arith.cmpf ogt, %118, %119 : vector<16x16xf32>
    %cst_58 = arith.constant 0.000000e+00 : f32
    %121 = vector.broadcast %cst_58 : f32 to vector<16x16xf32>
    %122 = arith.minimumf %118, %121 : vector<16x16xf32>
    %123 = math.exp %122 : vector<16x16xf32>
    %cst_59 = arith.constant 1.000000e+00 : f32
    %124 = vector.broadcast %cst_59 : f32 to vector<16x16xf32>
    %125 = arith.subf %123, %124 : vector<16x16xf32>
    %126 = arith.select %120, %118, %125 : vector<16x16xi1>, vector<16x16xf32>
    %c0_60 = arith.constant 0 : index
    %c0_61 = arith.constant 0 : index
    %127 = vector.load %arg10[%c0_60, %c0_61] : memref<16x32xf32, #tpu.memory_space<vmem>>, vector<16x16xf32>
    tpu.vector_store %arg10[%c0_60, %c0_61], %126 {strides = array<i32>} : memref<16x32xf32, #tpu.memory_space<vmem>>, vector<16x16xf32>,
    %128 = vector.extract_strided_slice %87 {offsets = [0, 16], sizes = [16, 16], strides = [1, 1]} : vector<16x32xf32> to vector<16x16xf32>
    %c1_62 = arith.constant 1 : index
    %c0_63 = arith.constant 0 : index
    %129 = vector.load %arg8[%c1_62, %c0_63] : memref<2x16xf32, #tpu.memory_space<vmem>>, vector<1x16xf32>
    %c1_64 = arith.constant 1 : index
    %c0_65 = arith.constant 0 : index
    %130 = vector.load %arg7[%c1_64, %c0_65] : memref<2x16xf32, #tpu.memory_space<vmem>>, vector<1x16xf32>
    %131 = vector.broadcast %129 : vector<1x16xf32> to vector<16x16xf32>
    %132 = arith.mulf %128, %131 : vector<16x16xf32>
    %cst_66 = arith.constant dense<0.000000e+00> : vector<16xf32>
    %133 = vector.multi_reduction <add>, %132, %cst_66 [1] : vector<16x16xf32> to vector<16xf32>
    %134 = vector.shape_cast %133 : vector<16xf32> to vector<16x1xf32>
    %cst_67 = arith.constant dense<0.000000e+00> : vector<1x16xf32>
    %135 = tpu.matmul %130, %128, %cst_67 {dimension_numbers = #tpu.dot_dimension_numbers<[1], [1], [0], [0], [0, 0, 1, 0], [], []>} : vector<1x16xf32>, vector<16x16xf32>, vector<1x16xf32> -> vector<1x16xf32>
    %136 = vector.broadcast %134 : vector<16x1xf32> to vector<16x16xf32>
    %137 = vector.broadcast %135 : vector<1x16xf32> to vector<16x16xf32>
    %138 = arith.addf %136, %137 : vector<16x16xf32>
    %cst_68 = arith.constant 0.000000e+00 : f32
    %139 = vector.broadcast %cst_68 : f32 to vector<16x16xf32>
    %140 = arith.cmpf ogt, %138, %139 : vector<16x16xf32>
    %cst_69 = arith.constant 2.000000e-01 : f32
    %141 = vector.broadcast %cst_69 : f32 to vector<16x16xf32>
    %142 = arith.mulf %141, %138 : vector<16x16xf32>
    %143 = arith.select %140, %138, %142 : vector<16x16xi1>, vector<16x16xf32>
    %cst_70 = arith.constant dense<0xFF800000> : vector<16xf32>
    %144 = vector.multi_reduction <maximumf>, %143, %cst_70 [1] : vector<16x16xf32> to vector<16xf32>
    %145 = vector.shape_cast %144 : vector<16xf32> to vector<16x1xf32>
    %146 = vector.broadcast %145 : vector<16x1xf32> to vector<16x16xf32>
    %147 = arith.subf %143, %146 : vector<16x16xf32>
    %148 = math.exp %147 : vector<16x16xf32>
    %149 = arith.mulf %1, %148 : vector<16x16xf32>
    %cst_71 = arith.constant dense<0.000000e+00> : vector<16x16xf32>
    %150 = tpu.matmul %149, %128, %cst_71 {dimension_numbers = #tpu.dot_dimension_numbers<[1], [0], [0], [1], [0, 0, 1, 1], [], []>} : vector<16x16xf32>, vector<16x16xf32>, vector<16x16xf32> -> vector<16x16xf32>
    %cst_72 = arith.constant dense<0.000000e+00> : vector<16xf32>
    %151 = vector.multi_reduction <add>, %149, %cst_72 [1] : vector<16x16xf32> to vector<16xf32>
    %152 = vector.shape_cast %151 : vector<16xf32> to vector<16x1xf32>
    %153 = tpu.reciprocal %152 {approx = true} : vector<16x1xf32> -> vector<16x1xf32>
    %154 = vector.broadcast %153 : vector<16x1xf32> to vector<16x16xf32>
    %155 = arith.mulf %150, %154 : vector<16x16xf32>
    %c0_73 = arith.constant 0 : index
    %c16 = arith.constant 16 : index
    %156 = vector.load %arg9[%c0_73, %c16] : memref<1x32xf32, #tpu.memory_space<vmem>>, vector<1x16xf32>
    %157 = vector.broadcast %156 : vector<1x16xf32> to vector<16x16xf32>
    %158 = arith.addf %155, %157 : vector<16x16xf32>
    %cst_74 = arith.constant 0.000000e+00 : f32
    %159 = vector.broadcast %cst_74 : f32 to vector<16x16xf32>
    %160 = arith.cmpf ogt, %158, %159 : vector<16x16xf32>
    %cst_75 = arith.constant 0.000000e+00 : f32
    %161 = vector.broadcast %cst_75 : f32 to vector<16x16xf32>
    %162 = arith.minimumf %158, %161 : vector<16x16xf32>
    %163 = math.exp %162 : vector<16x16xf32>
    %cst_76 = arith.constant 1.000000e+00 : f32
    %164 = vector.broadcast %cst_76 : f32 to vector<16x16xf32>
    %165 = arith.subf %163, %164 : vector<16x16xf32>
    %166 = arith.select %160, %158, %165 : vector<16x16xi1>, vector<16x16xf32>
    %c0_77 = arith.constant 0 : index
    %c16_78 = arith.constant 16 : index
    %167 = vector.load %arg10[%c0_77, %c16_78] : memref<16x32xf32, #tpu.memory_space<vmem>>, vector<16x16xf32>
    tpu.vector_store %arg10[%c0_77, %c16_78], %166 {strides = array<i32>} : memref<16x32xf32, #tpu.memory_space<vmem>>, vector<16x16xf32>,
    return
  }
}

</mosaic_0001>

<bundles_post_ra>
// kernel: tpu_custom_call.1
= control target key start
LH: loop header
LB: loop body
LE: loop exit
PB: predicated region body
PF: predicated region fallthrough
CT: control target
= control target key end

     0   :  { %vm46_vm0 = vcmask 261120   ;;  %s1728_s0 = inlined_call_operand.vmem [shape: bf16[16,16], index: 0, kind: input, shape index: {}]   ;;  %s1729_s1 = inlined_call_operand.vmem [shape: f32[16,32], index: 1, kind: input, shape index: {}]   ;;  %s1730_s2 = inlined_call_operand.vmem [shape: f32[32,64], index: 2, kind: input, shape index: {}]   ;;  %s1731_s3 = inlined_call_operand.vmem [shape: f32[2,32], index: 3, kind: input, shape index: {}]   ;;  %s1732_s4 = inlined_call_operand.vmem [shape: f32[2,32], index: 4, kind: input, shape index: {}]   ;;  %s1733_s5 = inlined_call_operand.vmem [shape: f32[1,64], index: 5, kind: input, shape index: {}]   ;;  %s1734_s6 = inlined_call_operand.vmem [shape: f32[64,32], index: 6, kind: input, shape index: {}]   ;;  %s1735_s7 = inlined_call_operand.vmem [shape: f32[2,16], index: 7, kind: input, shape index: {}]   ;;  %s1736_s8 = inlined_call_operand.vmem [shape: f32[2,16], index: 8, kind: input, shape index: {}]   ;;  %s1737_s9 = inlined_call_operand.vmem [shape: f32[1,32], index: 9, kind: input, shape index: {}]   ;;  %s1738_s10 = inlined_call_operand.hbm [shape: f32[16,32], index: 10, kind: output, shape index: {}]  }
   0x1   :  { %v45_v0 = vld [vmem:[%s1730_s2 + $0x18] sm:$0xff]  ;;  %v44_v1 = vld [vmem:[%s1730_s2 + $0x10] sm:$0xff]  ;;  %v40_v2 = vld [vmem:[%s1729_s1] sm:$0xff] }
   0x2   :  { %1311 = vmatprep.subr.mxu0 %v45_v0  ;;  %v43_v3 = vld [vmem:[%s1730_s2 + $0x8] sm:$0xff]  ;;  %1319 = vmatprep.mubr.msk.f32.mxu0 %vm46_vm0, %v40_v2  ;;  %v1234_v4 = vld [vmem:[%s1732_s4 + $0x1] ss:$0 sm:$0xff] }
   0x3   :  { %1312 = vmatpush3.msra.mxu0 %v45_v0 }
   0x4   :  { %15 = vsyncpa [#allocation4], 0  ;;  %1313 = vmatprep.subr.mxu0 %v44_v1  ;;  %s1476_s23 = smov 32   ;;  %v42_v5 = vld [vmem:[%s1730_s2] sm:$0xff]  ;;  %v41_v6 = vld [vmem:[%s1729_s1 + $0x8] sm:$0xff]  ;;  %v1477_v7 = vmov 0.0   ;;  %v221_v26 = vlaneseq }
   0x5   :  { %369 = vrot.lane.b32.xlu1 %v1234_v4, %s1476_s23  ;;  %1314 = vmatpush3.msra.mxu0 %v44_v1  ;;  %vm1478_vm1 = vmmov 0   ;;  %s1479_s28 = smov 96   ;;  %v129_v12 = vld [vmem:[%s1731_s3] sm:$0x1]  ;;  %v363_v22 = vld [vmem:[%s1731_s3 + $0x1] sm:$0x1] }
   0x6   :  { %1315 = vmatprep.subr.mxu0 %v43_v3  ;;  %1322 = vmatprep.subr.mxu1 %v1477_v7  ;;  %v1225_v14 = vld [vmem:[%s1732_s4] ss:$0 sm:$0xff]  ;;  %v222_v27 = vshrl.u32 %v221_v26, 7  ;;  %vm233_vm2 = vcmask 130048   ;;  %vm619_vm11 = vcmask 523520   ;;  %vm632_vm12 = vcmask 523264  }
   0x7   :  { %1316 = vmatpush3.msra.mxu0 %v43_v3  ;;  %1326 = vmatprep.mubr.msk.f32.mxu1 %vm1478_vm1, %v1477_v7  ;;  %v1264_v61 = vld [vmem:[%s1728_s0] sm:$0xff]   ;;  %s1480_s30 = smov 112   ;;  %s1481_s3 = smov 16  }
   0x8   :  { %1317 = vmatprep.subr.mxu0 %v42_v5  ;;  %v1605_v28 = vsub.s32 0, %v222_v27  ;;  %v1616_v62 = vunpack.c.l.bf16 %v1264_v61  ;;  %v1618_v63 = vunpack.c.h.bf16 %v1264_v61  ;;  %v626_v61 = vld [vmem:[%s1734_s6 + $0x10] sm:$0xff] }
   0x9   :  { %1318 = vmatpush3.msra.mxu0 %v42_v5 }
   0xa   :  { %1320 = vmatmul.mubr.msk.f32.vlgmr.msra.gmra.mxu0 %vm46_vm0, %v41_v6 }
  0x77   :  { %v370_v9 = vpop.permute.xlu1 %369 }
  0xca   :  { %v1321_v8 = vpop.f32.mrf.mxu0 }
  0xcb   :  { %390 = vrot.lane.b32.xlu0 %v1321_v8, %s1479_s28  ;;  %1323 = vmatpush3.xpose.msk.msra.mxu1 %vm46_vm0, %v1321_v8  ;;  %v373_v13 = vmul.f32 %v1321_v8, %v370_v9  ;;  %v135_v15 = vmul.f32 %v1321_v8, %v1225_v14 }
  0xcc   :  { %1329 = vmatprep.subr.mxu0 %v1321_v8  ;;  %v119_v10 = vpop.f32.mrf.mxu0  ;;  %1324 = vmatprep.subr.mxu1 %v1477_v7 }
  0xcd   :  { %1330 = vmatpush3.msra.mxu0 %v1321_v8  ;;  %v372_v11 = vmul.f32 %v370_v9, %v119_v10  ;;  %v134_v16 = vmul.f32 %v1225_v14, %v119_v10  ;;  %v139_v17 = vsel %vm46_vm0, %v135_v15, 0.0 }
  0xce   :  { %1331 = vmatprep.subr.mxu0 %v119_v10 }
  0xcf   :  { %1332 = vmatpush3.msra.mxu0 %v119_v10  ;;  %388 = vrot.lane.b32.xlu0 %v119_v10, %s1479_s28  ;;  %v136_v18 = vsel %vm46_vm0, %v134_v16, 0.0 }
  0xd0   :  { %376 = vrot.lane.b32.xlu1 %v372_v11, %s1479_s28  ;;  %1325 = vmatpush3.xpose.msk.msra.mxu1 %vm46_vm0, %v119_v10 }
  0xd1   :  { %1336 = vmatprep.subr.mxu1 %v1477_v7 }
  0xd3   :  { %1327 = vmatmul.mubr.msk.f32.vlgmr.msra.gmra.mxu1 %vm46_vm0, %v129_v12  ;;  %378 = vrot.lane.b32.xlu0 %v373_v13, %s1479_s28 }
  0xd4   :  { %1340 = vmatprep.mubr.msk.f32.mxu1 %vm1478_vm1, %v1477_v7 }
  0xf2   :  { %140 = vadd.xlane.f32.xlu0 %v139_v17 }
  0xf4   :  { %137 = vadd.xlane.f32.xlu1 %v136_v18 }
 0x13d   :  { %v1586_v19 = vpop.permute.xlu0 %390 }
 0x13e   :  { %1337 = vmatpush3.xpose.msk.msra.mxu1 %vm46_vm0, %v1586_v19  ;;  %1343 = vmatprep.subr.mxu0 %v1586_v19 }
 0x13f   :  { %1338 = vmatprep.subr.mxu1 %v1477_v7 }
 0x141   :  { %v1592_v20 = vpop.permute.xlu0 %388 }
 0x142   :  { %v377_v21 = vpop.permute.xlu1 %376  ;;  %1339 = vmatpush3.xpose.msk.msra.mxu1 %vm46_vm0, %v1592_v20 }
 0x143   :  { %v382_v23 = vsel %vm46_vm0, %v377_v21, 0.0  ;;  %1369 = vmatprep.subr.mxu1 %v1477_v7  ;;  %v630_v21 = vld [vmem:[%s1734_s6 + $0x30] sm:$0xff] }
 0x144   :  { %383 = vadd.xlane.f32.xlu0 %v382_v23 }
 0x145   :  { %v379_v24 = vpop.permute.xlu0 %378  ;;  %1341 = vmatmul.mubr.msk.f32.vlgmr.msra.gmra.mxu1 %vm46_vm0, %v363_v22  ;;  %v629_v22 = vld [vmem:[%s1734_s6 + $0x28] sm:$0xff] }
 0x146   :  { %v385_v25 = vsel %vm46_vm0, %v379_v24, 0.0  ;;  %1373 = vmatprep.mubr.msk.f32.mxu1 %vm1478_vm1, %v1477_v7 }
 0x147   :  { %386 = vadd.xlane.f32.xlu1 %v385_v25 }
 0x17b   :  { %v141_v30 = vpop.xlane.xlu0 %140 }
 0x17d   :  { %v138_v32 = vpop.xlane.xlu1 %137 }
 0x193   :  { %v217_v29 = vpop.f32.mrf.mxu1 }
 0x194   :  { %v224_v31 = vrot.slane %v217_v29, %v1605_v28 }
 0x195   :  { %v1328_v33 = vpop.f32.mrf.mxu1 }
 0x196   :  { %v225_v34 = vadd.f32 %v224_v31, %v138_v32  ;;  %v226_v35 = vadd.f32 %v224_v31, %v141_v30 }
 0x198   :  { %vm228_vm3 = vcmp.gt.f32.partialorder %v226_v35, 0.0  ;;  %v230_v36 = vmul.f32 0.2, %v226_v35  ;;  %vm227_vm4 = vcmp.gt.f32.partialorder %v225_v34, 0.0  ;;  %v229_v37 = vmul.f32 0.2, %v225_v34 }
 0x19a   :  { %v232_v38 = vsel %vm228_vm3, %v226_v35, %v230_v36  ;;  %v231_v39 = vsel %vm227_vm4, %v225_v34, %v229_v37 }
 0x19b   :  { %v237_v40 = vsel %vm233_vm2, %v232_v38, -inf  ;;  %v234_v41 = vsel %vm233_vm2, %v231_v39, -inf }
 0x19c   :  { %238 = vmax.xlane.f32.xlu1 %v237_v40  ;;  %235 = vmax.xlane.f32.xlu0 %v234_v41 }
 0x1cd   :  { %v384_v43 = vpop.xlane.xlu0 %383 }
 0x1d0   :  { %v387_v45 = vpop.xlane.xlu1 %386 }
 0x205   :  { %v465_v42 = vpop.f32.mrf.mxu1 }
 0x206   :  { %v472_v44 = vrot.slane %v465_v42, %v1605_v28 }
 0x207   :  { %v1342_v46 = vpop.f32.mrf.mxu1 }
 0x208   :  { %v473_v47 = vadd.f32 %v472_v44, %v384_v43  ;;  %v474_v48 = vadd.f32 %v472_v44, %v387_v45 }
 0x20a   :  { %vm475_vm5 = vcmp.gt.f32.partialorder %v473_v47, 0.0  ;;  %v477_v49 = vmul.f32 0.2, %v473_v47  ;;  %vm476_vm6 = vcmp.gt.f32.partialorder %v474_v48, 0.0  ;;  %v478_v50 = vmul.f32 0.2, %v474_v48 }
 0x20c   :  { %v479_v51 = vsel %vm475_vm5, %v473_v47, %v477_v49  ;;  %v480_v52 = vsel %vm476_vm6, %v474_v48, %v478_v50  ;;  %vm1204_vm5 = vcmask 261248  }
 0x20d   :  { %v481_v53 = vsel %vm233_vm2, %v479_v51, -inf  ;;  %v484_v54 = vsel %vm233_vm2, %v480_v52, -inf }
 0x20e   :  { %482 = vmax.xlane.f32.xlu0 %v481_v53  ;;  %485 = vmax.xlane.f32.xlu1 %v484_v54 }
 0x225   :  { %v236_v55 = vpop.xlane.xlu0 %235  ;;  %v239_v56 = vpop.xlane.xlu1 %238 }
 0x226   :  { %v240_v57 = vsub.f32 %v231_v39, %v236_v55  ;;  %v241_v58 = vsub.f32 %v232_v38, %v239_v56 }
 0x228   :  { %v242_v59 = vmul.f32 1.442695, %v240_v57  ;;  %v244_v60 = vmul.f32 1.442695, %v241_v58 }
 0x22a   :  { %1406 = vpow2.f32 %v242_v59  ;;  %v628_v59 = vld [vmem:[%s1734_s6 + $0x20] sm:$0xff] }
 0x22b   :  { %1408 = vpow2.f32 %v244_v60  ;;  %v627_v60 = vld [vmem:[%s1734_s6 + $0x18] sm:$0xff] }
 0x237   :  { %v1407_v0 = vpop.eup %1406 }
 0x238   :  { %v1409_v1 = vpop.eup %1408  ;;  %v246_v2 = vmul.f32 %v1407_v0, %v1616_v62  ;;  %v625_v0 = vld [vmem:[%s1734_s6 + $0x8] sm:$0xff] }
 0x239   :  { %v247_v3 = vmul.f32 %v1409_v1, %v1618_v63  ;;  %v624_v1 = vld [vmem:[%s1734_s6] sm:$0xff] }
 0x23a   :  { %1333 = vmatprep.mubr.msk.f32.mxu0 %vm233_vm2, %v246_v2  ;;  %v329_v17 = vsel %vm233_vm2, %v246_v2, 0.0 }
 0x23b   :  { %1334 = vmatmul.mubr.msk.f32.vlgmr.msra.gmra.mxu0 %vm233_vm2, %v247_v3  ;;  %v332_v18 = vsel %vm233_vm2, %v247_v3, 0.0 }
 0x23c   :  { %1344 = vmatpush3.msra.mxu0 %v1586_v19  ;;  %v1240_v19 = vld [vmem:[%s1733_s5] ss:$0 sm:$0xff] }
 0x23d   :  { %1345 = vmatprep.subr.mxu0 %v1592_v20 }
 0x23e   :  { %1346 = vmatpush3.msra.mxu0 %v1592_v20  ;;  %v631_v20 = vld [vmem:[%s1734_s6 + $0x38] sm:$0xff] }
 0x23f   :  { %1350 = vmatprep.subr.mxu0 %v631_v20 }
 0x297   :  { %v483_v4 = vpop.xlane.xlu0 %482  ;;  %v486_v5 = vpop.xlane.xlu1 %485 }
 0x298   :  { %v487_v6 = vsub.f32 %v479_v51, %v483_v4  ;;  %v488_v8 = vsub.f32 %v480_v52, %v486_v5 }
 0x29a   :  { %v489_v9 = vmul.f32 1.442695, %v487_v6  ;;  %v491_v10 = vmul.f32 1.442695, %v488_v8 }
 0x29c   :  { %1410 = vpow2.f32 %v489_v9 }
 0x29d   :  { %1412 = vpow2.f32 %v491_v10 }
 0x2a9   :  { %v1411_v11 = vpop.eup %1410 }
 0x2aa   :  { %v1413_v12 = vpop.eup %1412  ;;  %v493_v13 = vmul.f32 %v1411_v11, %v1616_v62 }
 0x2ab   :  { %v494_v14 = vmul.f32 %v1413_v12, %v1618_v63 }
 0x2ac   :  { %1347 = vmatprep.mubr.msk.f32.mxu0 %vm233_vm2, %v493_v13  ;;  %v578_v15 = vsel %vm233_vm2, %v493_v13, 0.0  ;;  %v1245_v13 = vld [vmem:[%s1736_s8] ss:$0 sm:$0xff] }
 0x2ad   :  { %v581_v16 = vsel %vm233_vm2, %v494_v14, 0.0  ;;  %579 = vadd.xlane.f32.xlu0 %v578_v15  ;;  %1348 = vmatmul.mubr.msk.f32.vlgmr.msra.gmra.mxu0 %vm233_vm2, %v494_v14 }
 0x2ae   :  { %582 = vadd.xlane.f32.xlu1 %v581_v16  ;;  %1351 = vmatpush3.msra.mxu0 %v631_v20  ;;  %v715_v20 = vld [vmem:[%s1735_s7] sm:$0x1] }
 0x2af   :  { %1352 = vmatprep.subr.mxu0 %v630_v21 }
 0x2b0   :  { %1353 = vmatpush3.msra.mxu0 %v630_v21  ;;  %v1254_v21 = vld [vmem:[%s1736_s8 + $0x1] ss:$0 sm:$0xff] }
 0x2b1   :  { %1354 = vmatprep.subr.mxu0 %v629_v22 }
 0x2b2   :  { %330 = vadd.xlane.f32.xlu1 %v329_v17  ;;  %1355 = vmatpush3.msra.mxu0 %v629_v22 }
 0x2b3   :  { %1356 = vmatprep.subr.mxu0 %v628_v59 }
 0x2b4   :  { %1357 = vmatpush3.msra.mxu0 %v628_v59 }
 0x2b5   :  { %1358 = vmatprep.subr.mxu0 %v627_v60 }
 0x2b6   :  { %333 = vadd.xlane.f32.xlu1 %v332_v18  ;;  %1359 = vmatpush3.msra.mxu0 %v627_v60 }
 0x2b7   :  { %1360 = vmatprep.subr.mxu0 %v626_v61 }
 0x2b8   :  { %1361 = vmatpush3.msra.mxu0 %v626_v61 }
 0x2b9   :  { %1362 = vmatprep.subr.mxu0 %v625_v0 }
 0x2ba   :  { %1363 = vmatpush3.msra.mxu0 %v625_v0 }
 0x2bb   :  { %1364 = vmatprep.subr.mxu0 %v624_v1 }
 0x2bc   :  { %1365 = vmatpush3.msra.mxu0 %v624_v1 }
 0x2c3   :  { %594 = vrot.lane.b32.xlu0 %v1240_v19, %s1479_s28 }
 0x2fb   :  { %v1335_v26 = vpop.f32.mrf.mxu0 }
 0x2fd   :  { %v320_v29 = vpop.f32.mrf.mxu0 }
 0x336   :  { %v580_v40 = vpop.xlane.xlu0 %579 }
 0x337   :  { %v583_v23 = vpop.xlane.xlu1 %582 }
 0x33a   :  { %v595_v48 = vpop.permute.xlu0 %594 }
 0x33b   :  { %v331_v24 = vpop.xlane.xlu1 %330 }
 0x33c   :  { %1414 = vrcp.f32 %v331_v24 }
 0x33f   :  { %v334_v25 = vpop.xlane.xlu1 %333 }
 0x340   :  { %1416 = vrcp.f32 %v334_v25 }
 0x349   :  { %v1415_v27 = vpop.eup %1414 }
 0x34a   :  { %v337_v30 = vmul.f32 %v1415_v27, %v320_v29 }
 0x34c   :  { %v346_v31 = vadd.f32 %v1240_v19, %v337_v30 }
 0x34d   :  { %v1417_v32 = vpop.eup %1416 }
 0x34e   :  { %v338_v33 = vmul.f32 %v1417_v32, %v1335_v26  ;;  %v350_v34 = vmin.f32 %v346_v31, 0.0  ;;  %vm348_vm7 = vcmp.gt.f32.partialorder %v346_v31, 0.0 }
 0x350   :  { %v347_v35 = vadd.f32 %v1240_v19, %v338_v33  ;;  %v352_v36 = vmul.f32 1.442695, %v350_v34 }
 0x352   :  { %v351_v37 = vmin.f32 %v347_v35, 0.0  ;;  %1418 = vpow2.f32 %v352_v36  ;;  %vm349_vm8 = vcmp.gt.f32.partialorder %v347_v35, 0.0 }
 0x354   :  { %v354_v38 = vmul.f32 1.442695, %v351_v37 }
 0x356   :  { %1420 = vpow2.f32 %v354_v38 }
 0x357   :  { %1422 = vrcp.f32 %v583_v23 }
 0x358   :  { %1424 = vrcp.f32 %v580_v40 }
 0x35f   :  { %v1419_v39 = vpop.eup %1418 }
 0x360   :  { %v1232_v41 = vadd.f32 -1.0, %v1419_v39 }
 0x362   :  { %v358_v42 = vsel %vm348_vm7, %v346_v31, %v1232_v41 }
 0x363   :  { %v1421_v43 = vpop.eup %1420  ;;  %360 = vst.msk [vmem:[#allocation2] sm:$0xff] %vm46_vm0, %v358_v42 }
 0x364   :  { %v1233_v44 = vadd.f32 -1.0, %v1421_v43  ;;  %v1423_v46 = vpop.eup %1422 }
 0x365   :  { %v1425_v50 = vpop.eup %1424 }
 0x366   :  { %v359_v45 = vsel %vm349_vm8, %v347_v35, %v1233_v44 }
 0x367   :  { %361 = vst.msk [vmem:[#allocation2 + $0x8] sm:$0xff] %vm46_vm0, %v359_v45 }
 0x36d   :  { %v1349_v47 = vpop.f32.mrf.mxu0 }
 0x36e   :  { %v587_v49 = vmul.f32 %v1423_v46, %v1349_v47 }
 0x36f   :  { %v569_v51 = vpop.f32.mrf.mxu0 }
 0x370   :  { %v598_v52 = vadd.f32 %v595_v48, %v587_v49  ;;  %v586_v53 = vmul.f32 %v1425_v50, %v569_v51 }
 0x372   :  { %v602_v54 = vmin.f32 %v598_v52, 0.0  ;;  %v597_v55 = vadd.f32 %v595_v48, %v586_v53  ;;  %vm600_vm9 = vcmp.gt.f32.partialorder %v598_v52, 0.0 }
 0x374   :  { %v605_v56 = vmul.f32 1.442695, %v602_v54  ;;  %v601_v57 = vmin.f32 %v597_v55, 0.0  ;;  %vm599_vm10 = vcmp.gt.f32.partialorder %v597_v55, 0.0 }
 0x376   :  { %1426 = vpow2.f32 %v605_v56  ;;  %v603_v58 = vmul.f32 1.442695, %v601_v57 }
 0x378   :  { %1428 = vpow2.f32 %v603_v58 }
 0x383   :  { %v1427_v2 = vpop.eup %1426 }
 0x384   :  { %v1242_v3 = vadd.f32 -1.0, %v1427_v2 }
 0x385   :  { %v1429_v4 = vpop.eup %1428 }
 0x386   :  { %v610_v5 = vsel %vm600_vm9, %v598_v52, %v1242_v3  ;;  %v1241_v6 = vadd.f32 -1.0, %v1429_v4 }
 0x387   :  { %615 = vrot.lane.b32.xlu0 %v610_v5, %s1476_s23 }
 0x388   :  { %v609_v8 = vsel %vm599_vm10, %v597_v55, %v1241_v6  ;;  %v948_v55 = vld [vmem:[%s1735_s7 + $0x1] sm:$0x1] }
 0x389   :  { %613 = vrot.lane.b32.xlu1 %v609_v8, %s1476_s23 }
 0x3f9   :  { %v616_v9 = vpop.permute.xlu0 %615 }
 0x3fa   :  { %621 = vst.msk [vmem:[#allocation2 + $0x8] sm:$0xff] %vm619_vm11, %v616_v9 }
 0x3fb   :  { %v614_v10 = vpop.permute.xlu1 %613 }
 0x3fc   :  { %620 = vst.msk [vmem:[#allocation2] sm:$0xff] %vm619_vm11, %v614_v10 }
 0x401   :  { %v623_v12 = vld [vmem:[#allocation2 + $0x8] sm:$0xff] }
 0x403   :  { %v622_v11 = vld [vmem:[#allocation2] sm:$0xff] }
 0x404   :  { %1366 = vmatprep.mubr.msk.f32.mxu0 %vm632_vm12, %v622_v11 }
 0x405   :  { %1367 = vmatmul.mubr.msk.f32.vlgmr.msra.gmra.mxu0 %vm632_vm12, %v623_v12 }
 0x4c5   :  { %v1368_v14 = vpop.f32.mrf.mxu0 }
 0x4c6   :  { %1370 = vmatpush3.xpose.msk.msra.mxu1 %vm233_vm2, %v1368_v14  ;;  %v721_v15 = vmul.f32 %v1368_v14, %v1245_v13 }
 0x4c7   :  { %v705_v16 = vpop.f32.mrf.mxu0  ;;  %1371 = vmatprep.subr.mxu1 %v1477_v7 }
 0x4c8   :  { %v725_v17 = vsel %vm233_vm2, %v721_v15, 0.0  ;;  %v720_v18 = vmul.f32 %v1245_v13, %v705_v16 }
 0x4c9   :  { %726 = vadd.xlane.f32.xlu1 %v725_v17 }
 0x4ca   :  { %1372 = vmatpush3.xpose.msk.msra.mxu1 %vm233_vm2, %v705_v16  ;;  %v722_v19 = vsel %vm233_vm2, %v720_v18, 0.0 }
 0x4cb   :  { %1376 = vmatprep.subr.mxu1 %v1368_v14  ;;  %723 = vadd.xlane.f32.xlu0 %v722_v19 }
 0x4cd   :  { %1374 = vmatmul.mubr.msk.f32.vlgmr.msra.gmra.mxu1 %vm233_vm2, %v715_v20 }
 0x4ce   :  { %1377 = vmatpush3.msra.mxu1 %v1368_v14 }
 0x4cf   :  { %1378 = vmatprep.subr.mxu1 %v705_v16 }
 0x4d0   :  { %1379 = vmatpush3.msra.mxu1 %v705_v16 }
 0x4d1   :  { %1383 = vmatprep.subr.mxu1 %v1477_v7 }
 0x4da   :  { %975 = vrot.lane.b32.xlu1 %v1368_v14, %s1480_s30 }
 0x4de   :  { %954 = vrot.lane.b32.xlu1 %v1254_v21, %s1481_s3 }
 0x552   :  { %v727_v22 = vpop.xlane.xlu1 %726 }
 0x554   :  { %v724_v29 = vpop.xlane.xlu0 %723 }
 0x556   :  { %v976_v23 = vpop.permute.xlu1 %975 }
 0x557   :  { %1390 = vmatprep.subr.mxu0 %v976_v23 }
 0x558   :  { %1391 = vmatpush3.msra.mxu0 %v976_v23 }
 0x55a   :  { %v955_v24 = vpop.permute.xlu1 %954 }
 0x55b   :  { %v957_v25 = vmul.f32 %v955_v24, %v705_v16  ;;  %v958_v39 = vmul.f32 %v1368_v14, %v955_v24 }
 0x55d   :  { %961 = vrot.lane.b32.xlu1 %v957_v25, %s1480_s30 }
 0x58d   :  { %v803_v26 = vpop.f32.mrf.mxu1 }
 0x58e   :  { %v810_v27 = vrot.slane %v803_v26, %v1605_v28 }
 0x58f   :  { %v1375_v30 = vpop.f32.mrf.mxu1 }
 0x590   :  { %v811_v31 = vadd.f32 %v810_v27, %v724_v29  ;;  %v812_v32 = vadd.f32 %v810_v27, %v727_v22 }
 0x592   :  { %vm813_vm13 = vcmp.gt.f32.partialorder %v811_v31, 0.0  ;;  %v815_v33 = vmul.f32 0.2, %v811_v31  ;;  %v816_v34 = vmul.f32 0.2, %v812_v32  ;;  %vm814_vm14 = vcmp.gt.f32.partialorder %v812_v32, 0.0 }
 0x594   :  { %v817_v35 = vsel %vm813_vm13, %v811_v31, %v815_v33  ;;  %v818_v37 = vsel %vm814_vm14, %v812_v32, %v816_v34 }
 0x595   :  { %v819_v36 = vsel %vm233_vm2, %v817_v35, -inf  ;;  %v822_v38 = vsel %vm233_vm2, %v818_v37, -inf }
 0x596   :  { %820 = vmax.xlane.f32.xlu0 %v819_v36 }
 0x59a   :  { %823 = vmax.xlane.f32.xlu0 %v822_v38 }
 0x5b0   :  { %973 = vrot.lane.b32.xlu0 %v705_v16, %s1480_s30 }
 0x5b4   :  { %963 = vrot.lane.b32.xlu0 %v958_v39, %s1480_s30 }
 0x5cf   :  { %v962_v40 = vpop.permute.xlu1 %961 }
 0x5d0   :  { %v967_v41 = vsel %vm233_vm2, %v962_v40, 0.0 }
 0x5d1   :  { %968 = vadd.xlane.f32.xlu1 %v967_v41 }
 0x61f   :  { %v821_v42 = vpop.xlane.xlu0 %820 }
 0x620   :  { %v825_v43 = vsub.f32 %v817_v35, %v821_v42 }
 0x622   :  { %v827_v44 = vmul.f32 1.442695, %v825_v43 }
 0x623   :  { %v824_v45 = vpop.xlane.xlu0 %823 }
 0x624   :  { %1430 = vpow2.f32 %v827_v44  ;;  %v826_v46 = vsub.f32 %v818_v37, %v824_v45 }
 0x626   :  { %v829_v47 = vmul.f32 1.442695, %v826_v46 }
 0x627   :  { %v974_v48 = vpop.permute.xlu0 %973 }
 0x628   :  { %1432 = vpow2.f32 %v829_v47  ;;  %1392 = vmatprep.subr.mxu0 %v974_v48 }
 0x629   :  { %1393 = vmatpush3.msra.mxu0 %v974_v48 }
 0x62b   :  { %v964_v49 = vpop.permute.xlu0 %963 }
 0x62c   :  { %v970_v50 = vsel %vm233_vm2, %v964_v49, 0.0 }
 0x62d   :  { %971 = vadd.xlane.f32.xlu0 %v970_v50 }
 0x631   :  { %v1431_v51 = vpop.eup %1430 }
 0x632   :  { %v831_v52 = vmul.f32 %v1431_v51, %v1616_v62 }
 0x634   :  { %1380 = vmatprep.mubr.msk.f32.mxu1 %vm233_vm2, %v831_v52  ;;  %v914_v20 = vsel %vm233_vm2, %v831_v52, 0.0 }
 0x635   :  { %v1433_v53 = vpop.eup %1432 }
 0x636   :  { %v832_v54 = vmul.f32 %v1433_v53, %v1618_v63 }
 0x638   :  { %1381 = vmatmul.mubr.msk.f32.vlgmr.msra.gmra.mxu1 %vm233_vm2, %v832_v54  ;;  %v917_v21 = vsel %vm233_vm2, %v832_v54, 0.0 }
 0x639   :  { %1384 = vmatpush3.xpose.msk.msra.mxu1 %vm233_vm2, %v976_v23  ;;  %1387 = vmatprep.mubr.msk.f32.mxu1 %vm1478_vm1, %v1477_v7 }
 0x63a   :  { %1385 = vmatprep.subr.mxu1 %v1477_v7 }
 0x63d   :  { %1386 = vmatpush3.xpose.msk.msra.mxu1 %vm233_vm2, %v974_v48 }
 0x640   :  { %1388 = vmatmul.mubr.msk.f32.vlgmr.msra.gmra.mxu1 %vm233_vm2, %v948_v55 }
 0x65a   :  { %v969_v59 = vpop.xlane.xlu1 %968 }
 0x6b6   :  { %v972_v61 = vpop.xlane.xlu0 %971 }
 0x6f8   :  { %v1382_v56 = vpop.f32.mrf.mxu1 }
 0x6fa   :  { %v905_v57 = vpop.f32.mrf.mxu1 }
 0x700   :  { %v1050_v58 = vpop.f32.mrf.mxu1 }
 0x701   :  { %v1057_v60 = vrot.slane %v1050_v58, %v1605_v28 }
 0x702   :  { %v1389_v0 = vpop.f32.mrf.mxu1 }
 0x703   :  { %v1058_v1 = vadd.f32 %v1057_v60, %v969_v59  ;;  %v1059_v2 = vadd.f32 %v1057_v60, %v972_v61 }
 0x705   :  { %vm1060_vm15 = vcmp.gt.f32.partialorder %v1058_v1, 0.0  ;;  %v1062_v7 = vmul.f32 0.2, %v1058_v1  ;;  %vm1061_vm0 = vcmp.gt.f32.partialorder %v1059_v2, 0.0  ;;  %v1063_v3 = vmul.f32 0.2, %v1059_v2 }
 0x707   :  { %v1064_v4 = vsel %vm1060_vm15, %v1058_v1, %v1062_v7  ;;  %v1065_v5 = vsel %vm1061_vm0, %v1059_v2, %v1063_v3 }
 0x708   :  { %v1066_v6 = vsel %vm233_vm2, %v1064_v4, -inf  ;;  %v1069_v8 = vsel %vm233_vm2, %v1065_v5, -inf }
 0x709   :  { %1067 = vmax.xlane.f32.xlu0 %v1066_v6  ;;  %1070 = vmax.xlane.f32.xlu1 %v1069_v8 }
 0x792   :  { %v1071_v9 = vpop.xlane.xlu1 %1070  ;;  %v1068_v10 = vpop.xlane.xlu0 %1067 }
 0x793   :  { %v1073_v11 = vsub.f32 %v1065_v5, %v1071_v9  ;;  %v1072_v28 = vsub.f32 %v1064_v4, %v1068_v10 }
 0x795   :  { %v1076_v12 = vmul.f32 1.442695, %v1073_v11  ;;  %v1074_v13 = vmul.f32 1.442695, %v1072_v28 }
 0x797   :  { %1434 = vpow2.f32 %v1076_v12 }
 0x798   :  { %1436 = vpow2.f32 %v1074_v13 }
 0x7a4   :  { %v1435_v14 = vpop.eup %1434 }
 0x7a5   :  { %v1437_v15 = vpop.eup %1436  ;;  %v1079_v16 = vmul.f32 %v1435_v14, %v1618_v63 }
 0x7a6   :  { %v1078_v17 = vmul.f32 %v1437_v15, %v1616_v62  ;;  %v1260_v62 = vld [vmem:[%s1737_s9] ss:$0 sm:$0xff]  ;;  %s1482_s9 = smov [#allocation3]  }
 0x7a7   :  { %v1166_v18 = vsel %vm233_vm2, %v1079_v16, 0.0  ;;  %s1212_s13 = sshll.u32 %s1482_s9, 4  ;;  %s1213_s13 = int_to_ptr.vmem [resolvable:$true] %s1212_s13 }
 0x7a8   :  { %1394 = vmatprep.mubr.msk.f32.mxu0 %vm233_vm2, %v1078_v17  ;;  %1167 = vadd.xlane.f32.xlu1 %v1166_v18  ;;  %v1163_v19 = vsel %vm233_vm2, %v1078_v17, 0.0  ;;  %s1454_s14 = scalar_lea.vmem %s1213_s13, 256  ;;  %p1459_p1 = scmp.lt.s32.totalorder %s1213_s13, %s1213_s13 }
 0x7a9   :  { %1164 = vadd.xlane.f32.xlu0 %v1163_v19  ;;  %1395 = vmatmul.mubr.msk.f32.vlgmr.msra.gmra.mxu0 %vm233_vm2, %v1079_v16  ;;  %p1455_p0 = scmp.ne.s32.totalorder %s1213_s13, %s1454_s14  ;;  %p1460_p2 = scmp.lt.s32.totalorder %s1454_s14, %s1454_s14 }
 0x7ab   :  { %p1461_p3 = por %p1460_p2, %p1459_p1 }
 0x7ac   :  { %915 = vadd.xlane.f32.xlu1 %v914_v20 }
 0x7ad   :  { %p1462_p4 = pnand %p1461_p3, %p1455_p0 }
 0x7b0   :  { %918 = vadd.xlane.f32.xlu1 %v917_v21 }
 0x7bf   :  { %1179 = vrot.lane.b32.xlu0 %v1260_v62, %s1480_s30 }
 0x831   :  { %v1168_v63 = vpop.xlane.xlu1 %1167 }
 0x832   :  { %v1165_v37 = vpop.xlane.xlu0 %1164 }
 0x835   :  { %v916_v22 = vpop.xlane.xlu1 %915 }
 0x836   :  { %1438 = vrcp.f32 %v916_v22  ;;  %v1180_v44 = vpop.permute.xlu0 %1179 }
 0x839   :  { %v919_v23 = vpop.xlane.xlu1 %918 }
 0x83a   :  { %1440 = vrcp.f32 %v919_v23 }
 0x843   :  { %v1439_v24 = vpop.eup %1438 }
 0x844   :  { %v922_v25 = vmul.f32 %v1439_v24, %v905_v57 }
 0x846   :  { %v931_v26 = vadd.f32 %v1260_v62, %v922_v25 }
 0x847   :  { %v1441_v27 = vpop.eup %1440 }
 0x848   :  { %v923_v29 = vmul.f32 %v1441_v27, %v1382_v56  ;;  %v935_v30 = vmin.f32 %v931_v26, 0.0  ;;  %vm933_vm1 = vcmp.gt.f32.partialorder %v931_v26, 0.0 }
 0x84a   :  { %v932_v31 = vadd.f32 %v1260_v62, %v923_v29  ;;  %v937_v32 = vmul.f32 1.442695, %v935_v30 }
 0x84c   :  { %v936_v33 = vmin.f32 %v932_v31, 0.0  ;;  %1442 = vpow2.f32 %v937_v32  ;;  %vm934_vm3 = vcmp.gt.f32.partialorder %v932_v31, 0.0 }
 0x84e   :  { %v939_v34 = vmul.f32 1.442695, %v936_v33 }
 0x850   :  { %1444 = vpow2.f32 %v939_v34 }
 0x851   :  { %1446 = vrcp.f32 %v1168_v63 }
 0x852   :  { %1448 = vrcp.f32 %v1165_v37 }
 0x859   :  { %v1443_v35 = vpop.eup %1442 }
 0x85a   :  { %v1252_v36 = vadd.f32 -1.0, %v1443_v35 }
 0x85c   :  { %v943_v38 = vsel %vm933_vm1, %v931_v26, %v1252_v36 }
 0x85d   :  { %v1445_v39 = vpop.eup %1444  ;;  %945 = vst.msk [vmem:[#allocation3] sm:$0xff] %vm233_vm2, %v943_v38 }
 0x85e   :  { %v1253_v40 = vadd.f32 -1.0, %v1445_v39  ;;  %v1447_v42 = vpop.eup %1446 }
 0x85f   :  { %v1449_v46 = vpop.eup %1448 }
 0x860   :  { %v944_v41 = vsel %vm934_vm3, %v932_v31, %v1253_v40 }
 0x861   :  { %946 = vst.msk [vmem:[#allocation3 + $0x8] sm:$0xff] %vm233_vm2, %v944_v41 }
 0x869   :  { %v1396_v43 = vpop.f32.mrf.mxu0 }
 0x86a   :  { %v1172_v45 = vmul.f32 %v1447_v42, %v1396_v43 }
 0x86b   :  { %v1154_v47 = vpop.f32.mrf.mxu0 }
 0x86c   :  { %v1183_v48 = vadd.f32 %v1180_v44, %v1172_v45  ;;  %v1171_v49 = vmul.f32 %v1449_v46, %v1154_v47 }
 0x86e   :  { %v1187_v50 = vmin.f32 %v1183_v48, 0.0  ;;  %v1182_v51 = vadd.f32 %v1180_v44, %v1171_v49  ;;  %vm1185_vm4 = vcmp.gt.f32.partialorder %v1183_v48, 0.0 }
 0x870   :  { %v1190_v52 = vmul.f32 1.442695, %v1187_v50  ;;  %v1186_v53 = vmin.f32 %v1182_v51, 0.0  ;;  %vm1184_vm2 = vcmp.gt.f32.partialorder %v1182_v51, 0.0 }
 0x872   :  { %1450 = vpow2.f32 %v1190_v52  ;;  %v1188_v54 = vmul.f32 1.442695, %v1186_v53 }
 0x874   :  { %1452 = vpow2.f32 %v1188_v54 }
 0x87f   :  { %v1451_v55 = vpop.eup %1450 }
 0x880   :  { %v1262_v56 = vadd.f32 -1.0, %v1451_v55 }
 0x881   :  { %v1453_v57 = vpop.eup %1452 }
 0x882   :  { %v1195_v58 = vsel %vm1185_vm4, %v1183_v48, %v1262_v56  ;;  %v1261_v59 = vadd.f32 -1.0, %v1453_v57 }
 0x883   :  { %1200 = vrot.lane.b32.xlu0 %v1195_v58, %s1481_s3 }
 0x884   :  { %v1194_v60 = vsel %vm1184_vm2, %v1182_v51, %v1261_v59 }
 0x885   :  { %1198 = vrot.lane.b32.xlu1 %v1194_v60, %s1481_s3 }
 0x8f5   :  { %v1201_v61 = vpop.permute.xlu0 %1200 }
 0x8f6   :  { %1206 = vst.msk [vmem:[#allocation3 + $0x8] sm:$0xff] %vm1204_vm5, %v1201_v61 }
 0x8f7   :  { %v1199_v0 = vpop.permute.xlu1 %1198 }
 0x8f8   :  { %1205 = vst.msk [vmem:[#allocation3] sm:$0xff] %vm1204_vm5, %v1199_v0 }
 0x8f9   :  { %1465 = shalt.err (!%p1462_p4)
}
 0x8fa   :  { %s1483_s15 = smov 128   ;;  %s1484_s16 = smov 8  }
 0x8fb   :  { %1218 = dma.vmem_to_hbm [thread:$0]  %s1213_s13, 256, %s1738_s10, [#allocation4], %s1483_s15, %s1483_s15, %s1484_s16  }
 0x8fc   :  { %1474 = dma.done.wait [#allocation4], 256  }
 0x8fd   :  { %1475 = vsyncadd [#allocation4], 4294967040 }
 0x8fe   :  { %1222 = vsyncpa [#allocation4], 1 }

</bundles_post_ra>
